<compile_context>
chip_gen: v7x
topology: tpu7x:2x2x1
jax: 0.10.0
libtpu: 0.0.40
codegen_flags: <defaults>
</compile_context>

<pallas_src>
import jax
import jax.numpy as jnp
from jax import lax
from jax.experimental import pallas as pl
from jax.experimental.pallas import tpu as pltpu


_LANE = 128


def _boundary_loss_kernel(delta_ref, n_ref, x_ref, proto_ref, mask_ref, part_ref):
    """One grid step over a TM-row tile of pooled_output.

    delta_ref : SMEM (1,) f32   raw delta parameter (pre-softplus)
    n_ref     : SMEM (1,) i32   number of valid rows N
    x_ref     : VMEM (TM, D)    tile of detached pooled_output (native dtype)
    proto_ref : VMEM (Q, D)     prototype queue (constant index_map -> resident)
    mask_ref  : VMEM (2, TM)    packed lane-dense output: row0=pos, row1=neg
    part_ref  : VMEM (1, 128)   this block's partial sum of |euc - d| (all lanes)
    """
    pid = pl.program_id(0)
    tm, d_feat = x_ref.shape

    # softplus(delta): splat the SMEM scalar into a (1,1) vreg so the exp/log
    # run on the EUP (its own bundle slot).
    d = jax.nn.softplus(jnp.full((1, 1), delta_ref[0], dtype=jnp.float32))

    # Queue mean, recomputed each step (Q x D sublane reduce — negligible next
    # to the TM x D tile).  No cross-step scratch => batch axis can be parallel.
    c = jnp.mean(proto_ref[...].astype(jnp.float32), axis=0, keepdims=True)   # (1, D)

    n_valid = n_ref[0]
    x = x_ref[...].astype(jnp.float32)                                        # in-kernel upcast

    # Ragged last block: rows >= N contain unspecified pipeline padding.  Use a
    # select (NOT a multiply) so Inf/NaN garbage cannot leak via 0*NaN.
    row = pid * tm + lax.broadcasted_iota(jnp.int32, (tm, 1), 0)
    diff = jnp.where(row < n_valid, x - c, 0.0)                               # (TM, D)
    sq = diff * diff

    # Row-sum over D on the MXU: ones(8,D) . sq (contract last dims of both,
    # the transpose-free q.k^T pattern).  Batch lands on LANES.
    ones_kd = jnp.ones((8, d_feat), dtype=jnp.float32)
    eucsq_t = lax.dot_general(
        ones_kd, sq,
        dimension_numbers=(((1,), (1,)), ((), ())),
        preferred_element_type=jnp.float32,
        precision=lax.Precision.HIGHEST)                                      # (8, TM)
    euc_t = jnp.sqrt(jnp.maximum(eucsq_t[0:1, :], 0.0))                       # (1, TM)

    pos = (euc_t > d).astype(jnp.float32)                                     # (1, TM)
    neg = (euc_t < d).astype(jnp.float32)                                     # (1, TM)

    # Two direct lane-dense sub-stores (no sublane concatenate).  Out-of-bounds
    # lanes of the last ragged block are masked by the pipeline writeback.
    mask_ref[0:1, :] = pos
    mask_ref[1:2, :] = neg

    # (euc-d)*pos_mask + (d-euc)*neg_mask == |euc - d|; exclude padded lanes.
    lane = pid * tm + lax.broadcasted_iota(jnp.int32, (1, tm), 1)
    valid = (lane < n_valid).astype(jnp.float32)                              # (1, TM)
    block_sum = jnp.sum(jnp.abs(euc_t - d) * valid, axis=1, keepdims=True)    # (1, 1)
    part_ref[...] = jnp.broadcast_to(block_sum, part_ref.shape)


def _choose_tile(n):
    """Batch tile (rows).  D=128 f32 => TM*512B per buffer, double-buffered."""
    if n <= 4096:
        return n            # single full-dim tile: no alignment constraint, no padding
    if n >= 32768:
        return 8192         # 4 MiB/buffer, >=4 grid steps (v7x-friendly)
    return 4096             # 2 MiB/buffer, 2-8 grid steps


def boundary_loss_forward(pooled_output, prototype, delta, *, tile_rows=None):
    """Pallas equivalent of BoundaryLoss.forward -> (loss, pos_mask, neg_mask).

    The stateful prototype/count ring-buffer update of the nn.Module is done
    separately in `update_prototype`; the unused `domain` argument is omitted.
    """
    pooled_output = lax.stop_gradient(pooled_output)       # .detach()
    n, d_feat = pooled_output.shape
    q = prototype.shape[0]
    assert prototype.shape[1] == d_feat

    if tile_rows is None:
        tm = _choose_tile(n)
    elif tile_rows >= n:
        tm = n
    else:
        assert tile_rows % _LANE == 0, "multi-tile row blocks must be 128-aligned"
        tm = tile_rows
    grid = pl.cdiv(n, tm)

    delta_smem = jnp.asarray(delta, jnp.float32).reshape((1,))
    n_smem = jnp.asarray([n], jnp.int32)

    masks, partials = pl.pallas_call(
        _boundary_loss_kernel,
        out_shape=(
            jax.ShapeDtypeStruct((2, n), jnp.float32),            # packed pos/neg masks
            jax.ShapeDtypeStruct((1, _LANE * grid), jnp.float32),  # per-block partial sums
        ),
        grid=(grid,),
        in_specs=[
            pl.BlockSpec(memory_space=pltpu.MemorySpace.SMEM),     # delta (raw)
            pl.BlockSpec(memory_space=pltpu.MemorySpace.SMEM),     # n valid rows
            pl.BlockSpec((tm, d_feat), lambda i: (i, 0)),          # pooled_output tile
            pl.BlockSpec((q, d_feat), lambda i: (0, 0)),           # prototype (resident)
        ],
        out_specs=(
            pl.BlockSpec((2, tm), lambda i: (0, i)),               # lane-dense masks
            pl.BlockSpec((1, _LANE), lambda i: (0, i)),            # partial sums
        ),
        compiler_params=pltpu.CompilerParams(
            # No cross-step scratch => safe to split the batch axis across
            # v7x's two TensorCores; neutral on single-TC v5e/v6e.
            dimension_semantics=("parallel",),
        ),
    )(delta_smem, n_smem, pooled_output, prototype)

    # mean(pos_loss) + mean(neg_loss) == sum(|euc - d|) / N  (rows on the
    # boundary contribute 0 to both terms, matching the strict comparisons).
    loss = jnp.sum(partials.reshape(grid, _LANE)[:, 0]) * (1.0 / n)

    # TODO(synk): training `delta` through this kernel needs a custom_vjp
    # (d loss/d delta_raw = (sum(neg)-sum(pos))/N * sigmoid(delta_raw));
    # this implements the forward pass only.
    return loss, masks[0], masks[1]


def update_prototype(prototype, count, pooled_output, hidden):
    """Host-side replica of the module's prototype/count ring-buffer update."""
    tmp_c = jnp.mean(pooled_output, axis=0)
    if count <= hidden - 1:
        prototype = prototype.at[count, :].set(tmp_c)
        count = count + 1
    else:
        count = 0
        prototype = prototype.at[count, :].set(tmp_c)
    return prototype, count


def _reference(pooled_output, prototype, delta):
    d = jax.nn.softplus(jnp.asarray(delta, jnp.float32).reshape(()))
    c = jnp.mean(prototype.astype(jnp.float32), axis=0, keepdims=True)
    euc = jnp.sqrt(jnp.sum((pooled_output.astype(jnp.float32) - c) ** 2, axis=1))
    pos = (euc > d).astype(jnp.float32)
    neg = (euc < d).astype(jnp.float32)
    loss = jnp.mean((euc - d) * pos) + jnp.mean((d - euc) * neg)
    return loss, pos, neg, euc, d


if __name__ == "__main__":
    key = jax.random.PRNGKey(0)
    k_x, k_delta, k_x2, k_proto2 = jax.random.split(key, 4)

    # --- Test 1: mirrors the module's __init__ (zero prototype buffer). ----
    N = 8          # batch of pooled feature vectors
    D = 128        # feature dim fixed by the module (prototype buffer is [queue_len, 128])
    queue_len = 8  # self.hidden

    delta = jax.random.normal(k_delta, (1,), dtype=jnp.float32)
    prototype = jnp.zeros((queue_len, D), dtype=jnp.float32)
    count = 0
    pooled_output = jax.random.normal(k_x, (N, D), dtype=jnp.float32)

    loss, pos_mask, neg_mask = boundary_loss_forward(pooled_output, prototype, delta)
    jax.block_until_ready((loss, pos_mask, neg_mask))

    ref_loss, ref_pos, ref_neg, _, _ = _reference(pooled_output, prototype, delta)
    assert jnp.allclose(loss, ref_loss, rtol=2e-3, atol=2e-3)
    assert jnp.array_equal(pos_mask, ref_pos)
    assert jnp.array_equal(neg_mask, ref_neg)

    # --- Test 2: ragged multi-tile path (N not a multiple of the tile). ----
    N2 = 300
    x2 = jax.random.normal(k_x2, (N2, D), dtype=jnp.float32)
    proto2 = jax.random.normal(k_proto2, (queue_len, D), dtype=jnp.float32)
    delta2 = jnp.asarray([11.0], dtype=jnp.float32)   # puts d near the euc distribution -> mixed masks

    loss2, pos2, neg2 = boundary_loss_forward(x2, proto2, delta2, tile_rows=128)
    jax.block_until_ready((loss2, pos2, neg2))

    ref_loss2, ref_pos2, ref_neg2, ref_euc2, ref_d2 = _reference(x2, proto2, delta2)
    assert jnp.allclose(loss2, ref_loss2, rtol=2e-3, atol=2e-3)
    # Compare masks away from the decision boundary (strict > / < comparisons).
    safe = jnp.abs(ref_euc2 - ref_d2) > 1e-3
    assert bool(jnp.all(jnp.where(safe, pos2 == ref_pos2, True)))
    assert bool(jnp.all(jnp.where(safe, neg2 == ref_neg2, True)))

    # Stateful buffer update (matches the PyTorch module's Python branching).
    prototype, count = update_prototype(prototype, count, pooled_output, queue_len)
    jax.block_until_ready(prototype)

    print("KERNEL_OK")
</pallas_src>

<mosaic_0001>
module attributes {stable_mosaic.version = 11 : i64} {
  func.func @_boundary_loss_kernel(%arg0: i32, %arg1: memref<1xf32, #tpu.memory_space<smem>>, %arg2: memref<1xi32, #tpu.memory_space<smem>>, %arg3: memref<8x128xf32, #tpu.memory_space<vmem>>, %arg4: memref<8x128xf32, #tpu.memory_space<vmem>>, %arg5: memref<2x8xf32, #tpu.memory_space<vmem>>, %arg6: memref<1x128xf32, #tpu.memory_space<vmem>>) attributes {dimension_semantics = [#tpu.dimension_semantics<parallel>], iteration_bounds = array<i64: 1>, scalar_prefetch = 0 : i64, scratch_operands = 0 : i64, tpu.core_type = #tpu.core_type<tc>, window_params = [{transform_indices = @transform_0, window_bounds = array<i64: 1>}, {transform_indices = @transform_1, window_bounds = array<i64: 1>}, {transform_indices = @transform_2, window_bounds = array<i64: 8, 128>}, {pipeline_mode = #tpu.pipeline_mode<synchronous>, transform_indices = @transform_3, window_bounds = array<i64: 8, 128>}, {transform_indices = @transform_4, window_bounds = array<i64: 2, 8>}, {transform_indices = @transform_5, window_bounds = array<i64: 1, 128>}]} {
    %c0 = arith.constant 0 : index
    %0 = memref.load %arg1[%c0] : memref<1xf32, #tpu.memory_space<smem>>
    %1 = vector.broadcast %0 : f32 to vector<1x1xf32>
    %cst = arith.constant 0.000000e+00 : f32
    %2 = vector.broadcast %cst : f32 to vector<1x1xf32>
    %3 = arith.maximumf %1, %2 : vector<1x1xf32>
    %4 = vector.broadcast %cst : f32 to vector<1x1xf32>
    %5 = arith.subf %1, %4 : vector<1x1xf32>
    %6 = arith.cmpf one, %5, %5 : vector<1x1xf32>
    %7 = vector.broadcast %cst : f32 to vector<1x1xf32>
    %8 = arith.addf %1, %7 : vector<1x1xf32>
    %9 = math.absf %5 : vector<1x1xf32>
    %cst_0 = arith.constant 0.000000e+00 : f32
    %10 = vector.broadcast %cst_0 : f32 to vector<1x1xf32>
    %11 = arith.subf %10, %9 : vector<1x1xf32>
    %12 = math.exp %11 : vector<1x1xf32>
    %13 = math.log1p %12 : vector<1x1xf32>
    %14 = arith.addf %3, %13 : vector<1x1xf32>
    %15 = arith.select %6, %8, %14 : vector<1x1xi1>, vector<1x1xf32>
    %c0_1 = arith.constant 0 : index
    %c0_2 = arith.constant 0 : index
    %16 = vector.load %arg4[%c0_1, %c0_2] : memref<8x128xf32, #tpu.memory_space<vmem>>, vector<8x128xf32>
    %cst_3 = arith.constant dense<0.000000e+00> : vector<128xf32>
    %17 = vector.multi_reduction <add>, %16, %cst_3 [0] : vector<8x128xf32> to vector<128xf32>
    %18 = vector.shape_cast %17 : vector<128xf32> to vector<1x128xf32>
    %cst_4 = arith.constant 8.000000e+00 : f32
    %19 = vector.broadcast %cst_4 : f32 to vector<1x128xf32>
    %20 = arith.divf %18, %19 : vector<1x128xf32>
    %c0_5 = arith.constant 0 : index
    %21 = memref.load %arg2[%c0_5] : memref<1xi32, #tpu.memory_space<smem>>
    %c0_6 = arith.constant 0 : index
    %c0_7 = arith.constant 0 : index
    %22 = vector.load %arg3[%c0_6, %c0_7] : memref<8x128xf32, #tpu.memory_space<vmem>>, vector<8x128xf32>
    %c8_i32 = arith.constant 8 : i32
    %23 = arith.muli %arg0, %c8_i32 : i32
    %24 = tpu.iota {dimensions = array<i32: 0>} : vector<8x1xi32>
    %25 = vector.broadcast %23 : i32 to vector<8x1xi32>
    %26 = arith.addi %25, %24 : vector<8x1xi32>
    %27 = vector.broadcast %21 : i32 to vector<8x1xi32>
    %28 = arith.cmpi slt, %26, %27 : vector<8x1xi32>
    %29 = vector.broadcast %20 : vector<1x128xf32> to vector<8x128xf32>
    %30 = arith.subf %22, %29 : vector<8x128xf32>
    %cst_8 = arith.constant 0.000000e+00 : f32
    %31 = vector.shape_cast %28 : vector<8x1xi1> to vector<8x1xi1>
    %32 = vector.broadcast %31 : vector<8x1xi1> to vector<8x128xi1>
    %33 = vector.broadcast %cst_8 : f32 to vector<8x128xf32>
    %34 = arith.select %32, %30, %33 : vector<8x128xi1>, vector<8x128xf32>
    %35 = arith.mulf %34, %34 : vector<8x128xf32>
    %cst_9 = arith.constant 1.000000e+00 : f32
    %36 = vector.broadcast %cst_9 : f32 to vector<8x128xf32>
    %cst_10 = arith.constant dense<0.000000e+00> : vector<8x8xf32>
    %37 = tpu.matmul %36, %35, %cst_10 {dimension_numbers = #tpu.dot_dimension_numbers<[1], [1], [0], [0], [0, 0, 1, 0], [], []>, precision = #tpu.contract_precision<fp32>} : vector<8x128xf32>, vector<8x128xf32>, vector<8x8xf32> -> vector<8x8xf32>
    %38 = vector.extract_strided_slice %37 {offsets = [0, 0], sizes = [1, 8], strides = [1, 1]} : vector<8x8xf32> to vector<1x8xf32>
    %cst_11 = arith.constant 0.000000e+00 : f32
    %39 = vector.broadcast %cst_11 : f32 to vector<1x8xf32>
    %40 = arith.maximumf %38, %39 : vector<1x8xf32>
    %41 = math.sqrt %40 : vector<1x8xf32>
    %42 = vector.broadcast %15 : vector<1x1xf32> to vector<1x8xf32>
    %43 = arith.cmpf ogt, %41, %42 : vector<1x8xf32>
    %44 = arith.extui %43 : vector<1x8xi1> to vector<1x8xi32>
    %45 = arith.sitofp %44 : vector<1x8xi32> to vector<1x8xf32>
    %46 = vector.broadcast %15 : vector<1x1xf32> to vector<1x8xf32>
    %47 = arith.cmpf olt, %41, %46 : vector<1x8xf32>
    %48 = arith.extui %47 : vector<1x8xi1> to vector<1x8xi32>
    %49 = arith.sitofp %48 : vector<1x8xi32> to vector<1x8xf32>
    %c0_12 = arith.constant 0 : index
    %c0_13 = arith.constant 0 : index
    %50 = vector.load %arg5[%c0_12, %c0_13] : memref<2x8xf32, #tpu.memory_space<vmem>>, vector<1x8xf32>
    tpu.vector_store %arg5[%c0_12, %c0_13], %45 {strides = array<i32>} : memref<2x8xf32, #tpu.memory_space<vmem>>, vector<1x8xf32>,
    %c1 = arith.constant 1 : index
    %c0_14 = arith.constant 0 : index
    %51 = vector.load %arg5[%c1, %c0_14] : memref<2x8xf32, #tpu.memory_space<vmem>>, vector<1x8xf32>
    tpu.vector_store %arg5[%c1, %c0_14], %49 {strides = array<i32>} : memref<2x8xf32, #tpu.memory_space<vmem>>, vector<1x8xf32>,
    %c8_i32_15 = arith.constant 8 : i32
    %52 = arith.muli %arg0, %c8_i32_15 : i32
    %53 = tpu.iota {dimensions = array<i32: 1>} : vector<1x8xi32>
    %54 = vector.broadcast %52 : i32 to vector<1x8xi32>
    %55 = arith.addi %54, %53 : vector<1x8xi32>
    %56 = vector.broadcast %21 : i32 to vector<1x8xi32>
    %57 = arith.cmpi slt, %55, %56 : vector<1x8xi32>
    %58 = arith.extui %57 : vector<1x8xi1> to vector<1x8xi32>
    %59 = arith.sitofp %58 : vector<1x8xi32> to vector<1x8xf32>
    %60 = vector.broadcast %15 : vector<1x1xf32> to vector<1x8xf32>
    %61 = arith.subf %41, %60 : vector<1x8xf32>
    %62 = math.absf %61 : vector<1x8xf32>
    %63 = arith.mulf %62, %59 : vector<1x8xf32>
    %cst_16 = arith.constant dense<0.000000e+00> : vector<1xf32>
    %64 = vector.multi_reduction <add>, %63, %cst_16 [1] : vector<1x8xf32> to vector<1xf32>
    %65 = vector.shape_cast %64 : vector<1xf32> to vector<1x1xf32>
    %66 = vector.shape_cast %65 : vector<1x1xf32> to vector<1x1xf32>
    %67 = vector.broadcast %66 : vector<1x1xf32> to vector<1x128xf32>
    %c0_17 = arith.constant 0 : index
    %c0_18 = arith.constant 0 : index
    %68 = vector.load %arg6[%c0_17, %c0_18] : memref<1x128xf32, #tpu.memory_space<vmem>>, vector<1x128xf32>
    tpu.vector_store %arg6[%c0_17, %c0_18], %67 {strides = array<i32>} : memref<1x128xf32, #tpu.memory_space<vmem>>, vector<1x128xf32>,
    return
  }
  func.func @transform_0(%arg0: i32) -> i32 {
    %c0_i32 = arith.constant 0 : i32
    %c0_i32_0 = arith.constant 0 : i32
    return %c0_i32 : i32
  }
  func.func @transform_1(%arg0: i32) -> i32 {
    %c0_i32 = arith.constant 0 : i32
    %c0_i32_0 = arith.constant 0 : i32
    return %c0_i32 : i32
  }
  func.func @transform_2(%arg0: i32) -> (i32, i32) {
    %c0_i32 = arith.constant 0 : i32
    %c0_i32_0 = arith.constant 0 : i32
    return %arg0, %c0_i32 : i32, i32
  }
  func.func @transform_3(%arg0: i32) -> (i32, i32) {
    %c0_i32 = arith.constant 0 : i32
    %c0_i32_0 = arith.constant 0 : i32
    %c0_i32_1 = arith.constant 0 : i32
    return %c0_i32, %c0_i32_0 : i32, i32
  }
  func.func @transform_4(%arg0: i32) -> (i32, i32) {
    %c0_i32 = arith.constant 0 : i32
    %c0_i32_0 = arith.constant 0 : i32
    return %c0_i32, %arg0 : i32, i32
  }
  func.func @transform_5(%arg0: i32) -> (i32, i32) {
    %c0_i32 = arith.constant 0 : i32
    %c0_i32_0 = arith.constant 0 : i32
    return %c0_i32, %arg0 : i32, i32
  }
}

</mosaic_0001>

<bundles_post_ra>
// kernel: tpu_custom_call.1
= control target key start
LH: loop header
LB: loop body
LE: loop exit
PB: predicated region body
PF: predicated region fallthrough
CT: control target
= control target key end

     0   :  { %13 = vsyncpa [#allocation5], 0  ;;  %s823_s0 = inlined_call_operand.<no memory space> [shape: f32[1], index: 0, kind: input, shape index: {}]   ;;  %s824_s1 = inlined_call_operand.<no memory space> [shape: s32[1], index: 1, kind: input, shape index: {}]   ;;  %s825_s2 = inlined_call_operand.hbm [shape: f32[8,128], index: 2, kind: input, shape index: {}]   ;;  %s826_s3 = inlined_call_operand.vmem [shape: f32[8,128], index: 3, kind: input, shape index: {}]   ;;  %s827_s4 = inlined_call_operand.hbm [shape: f32[2,8], index: 4, kind: output, shape index: {0}]   ;;  %s828_s5 = inlined_call_operand.hbm [shape: f32[1,128], index: 5, kind: output, shape index: {1}]  }
   0x1   :  { %14 = vsyncpa [#allocation6], 0 }
   0x2   :  { %15 = vsyncpa [#allocation9], 0  ;;  %s708_s18 = smov [#allocation4]   ;;  %s636_s22 = scalar_lea.hbm %s825_s2, 128 }
   0x3   :  { %s26_s19 = sshll.u32 %s708_s18, 4  ;;  %p637_p0 = scmp.ne.s32.totalorder %s825_s2, %s636_s22  ;;  %s27_s19 = int_to_ptr.vmem [resolvable:$true] %s26_s19 }
   0x4   :  { %p640_p1 = scmp.lt.u32.totalorder %s636_s22, %s825_s2 }
   0x6   :  { %p642_p2 = pnand %p640_p1, %p637_p0 }
   0x8   :  { %645 = shalt.err (!%p642_p2)
}
   0x9   :  { %s646_s27 = scalar_lea.vmem %s27_s19, 128  ;;  %p651_p4 = scmp.lt.s32.totalorder %s27_s19, %s27_s19 }
   0xa   :  { %p647_p3 = scmp.ne.s32.totalorder %s27_s19, %s646_s27  ;;  %p652_p5 = scmp.lt.s32.totalorder %s646_s27, %s646_s27 }
   0xc   :  { %p653_p6 = por %p652_p5, %p651_p4 }
   0xe   :  { %p654_p7 = pnand %p653_p6, %p647_p3 }
  0x10   :  { %657 = shalt.err (!%p654_p7)
}
  0x11   :  { %29 = dma.hbm_to_vmem [thread:$0]  %s825_s2, 128, %s27_s19, [#allocation5]  }
  0x12   :  { %702 = dma.done.wait [#allocation5], 128  }
  0x13   :  { %703 = vsyncadd [#allocation5], 4294967168  ;;  %v709_v0 = vmov 0.0   ;;  %vm710_vm0 = vmmov 0   ;;  %v55_v1 = vld [vmem:[%s826_s3] sm:$0xff]  ;;  %v67_v5 = vlaneseq  ;;  %v71_v10 = vstv %s824_s1  ;;  %s712_s12 = smov [#allocation7]  }
  0x14   :  { %585 = vmatprep.subr.mxu1 %v709_v0  ;;  %600 = vmatprep.subr.mxu0 %v709_v0  ;;  %v56_v2 = vrot.slane %v55_v1, 4  ;;  %v65_v11 = vld [vmem:[#allocation4] sm:$0xff]  ;;  %v711_v21 = vmov 1.0   ;;  %v36_v22 = vstv %s823_s0  ;;  %vm525_vm7 = vcmask 57344   ;;  %s547_s1 = sshll.u32 %s712_s12, 4  ;;  %s548_s1 = int_to_ptr.vmem [resolvable:$true] %s547_s1 }
  0x15   :  { %587 = vmatprep.mubr.msk.f32.mxu1 %vm710_vm0, %v709_v0  ;;  %602 = vmatprep.mubr.msk.f32.mxu0 %vm710_vm0, %v709_v0  ;;  %v68_v8 = vshrl.u32 %v67_v5, 7  ;;  %v40_v23 = vand.u32 2147483647, %v36_v22  ;;  %v37_v40 = vmax.f32 %v36_v22, 0.0  ;;  %vm38_vm3 = vcmp.ne.f32.partialorder %v36_v22, %v36_v22  ;;  %s658_s13 = scalar_lea.vmem %s548_s1, 32  ;;  %p663_p9 = scmp.lt.s32.totalorder %s548_s1, %s548_s1 }
  0x16   :  { %v57_v3 = vadd.f32 %v56_v2, %v55_v1  ;;  %v529_v43 = vand.u32 127, %v67_v5  ;;  %p659_p8 = scmp.ne.s32.totalorder %s548_s1, %s658_s13  ;;  %p664_p10 = scmp.lt.s32.totalorder %s658_s13, %s658_s13 }
  0x17   :  { %vm72_vm1 = vcmp.lt.s32.totalorder %v68_v8, %v71_v10  ;;  %v41_v24 = vsub.f32 0.0, %v40_v23 }
  0x18   :  { %v58_v4 = vrot.slane %v57_v3, 2  ;;  %vm531_vm6 = vcmp.lt.s32.totalorder %v529_v43, %v71_v10  ;;  %p665_p11 = por %p664_p10, %p663_p9 }
  0x19   :  { %v42_v25 = vmul.f32 1.442695, %v41_v24  ;;  %v572_v51 = vsel %vm531_vm6, 1.0, %v709_v0 }
  0x1a   :  { %v59_v6 = vadd.f32 %v58_v4, %v57_v3  ;;  %p666_p12 = pnand %p665_p11, %p659_p8 }
  0x1b   :  { %630 = vpow2.f32 %v42_v25 }
  0x1c   :  { %v60_v7 = vrot.slane %v59_v6, 1 }
  0x1e   :  { %v61_v9 = vadd.f32 %v60_v7, %v59_v6 }
  0x20   :  { %v63_v12 = vmul.f32 0.125, %v61_v9 }
  0x22   :  { %v73_v13 = vsub.f32 %v65_v11, %v63_v12 }
  0x24   :  { %v76_v14 = vsel %vm72_vm1, %v73_v13, 0.0 }
  0x25   :  { %v77_v15 = vmul.f32 %v76_v14, %v76_v14  ;;  %v631_v26 = vpop.eup %630 }
  0x26   :  { %v44_v27 = vadd.f32 1.0, %v631_v26  ;;  %v47_v28 = vmul.f32 -0.5, %v631_v26  ;;  %v50_v37 = vand.u32 2147483647, %v631_v26 }
  0x27   :  { %v79_v16 = vand.u32 4294901760, %v77_v15 }
  0x28   :  { %632 = vlog2.f32 %v44_v27  ;;  %v48_v34 = vadd.f32 1.0, %v47_v28  ;;  %vm51_vm2 = vcmp.lt.f32.partialorder %v50_v37, 0.0004427343 }
  0x29   :  { %586 = vmatpush3.xpose.msra.mxu1 %v79_v16  ;;  %v151_v17 = vsub.f32 %v77_v15, %v79_v16  ;;  %601 = vmatpush3.xpose.msra.mxu0 %v79_v16 }
  0x2a   :  { %590 = vmatprep.subr.mxu1 %v709_v0  ;;  %605 = vmatprep.subr.mxu0 %v709_v0  ;;  %v49_v39 = vmul.f32 %v631_v26, %v48_v34 }
  0x2b   :  { %v152_v18 = vand.u32 4294901760, %v151_v17 }
  0x2c   :  { %588 = vmatmul.mubr.f32.vlgmr.msra.gmra.mrb[0].mxu1 %v709_v0  ;;  %603 = vmatmul.mubr.f32.vlgmr.msra.gmra.mrb[0].mxu0 %v709_v0 }
  0x2d   :  { %v153_v19 = vsub.f32 %v151_v17, %v152_v18  ;;  %606 = vmatpush3.xpose.msra.mxu0 %v152_v18  ;;  %592 = vmatprep.mubr.msk.f32.mxu1 %vm710_vm0, %v709_v0 }
  0x2e   :  { %607 = vmatprep.mubr.msk.f32.mxu0 %vm710_vm0, %v709_v0  ;;  %610 = vmatprep.subr.mxu0 %v709_v0 }
  0x2f   :  { %v154_v20 = vand.u32 4294901760, %v153_v19 }
  0x31   :  { %591 = vmatpush3.xpose.msra.mxu1 %v154_v20 }
  0x32   :  { %595 = vmatprep.subr.mxu1 %v709_v0  ;;  %v633_v35 = vpop.eup %632 }
  0x33   :  { %v46_v38 = vmul.f32 0.6931472, %v633_v35 }
  0x34   :  { %593 = vmatmul.mubr.f32.vlgmr.msra.gmra.mrb[0].mxu1 %v711_v21  ;;  %608 = vmatmul.mubr.f32.vlgmr.msra.gmra.mrb[0].mxu0 %v711_v21 }
  0x35   :  { %596 = vmatpush3.xpose.msra.mxu1 %v151_v17  ;;  %611 = vmatpush3.xpose.msra.mxu0 %v79_v16  ;;  %v52_v41 = vsel %vm51_vm2, %v49_v39, %v46_v38 }
  0x36   :  { %597 = vmatprep.mubr.msk.f32.mxu1 %vm710_vm0, %v709_v0  ;;  %612 = vmatprep.mubr.msk.f32.mxu0 %vm710_vm0, %v709_v0  ;;  %v53_v42 = vadd.f32 %v52_v41, %v37_v40 }
  0x38   :  { %v54_v46 = vsel %vm38_vm3, %v36_v22, %v53_v42 }
  0x3c   :  { %598 = vmatmul.mubr.f32.vlgmr.msra.gmra.mrb[0].mxu1 %v709_v0  ;;  %613 = vmatmul.mubr.f32.vlgmr.msra.gmra.mrb[0].mxu0 %v711_v21 }
 0x10f   :  { %v292_v29 = vpop.f32.mrb[0].mxu1  ;;  %v507_v30 = vpop.f32.mrb[0].mxu0 }
 0x110   :  { %v615_v31 = vadd.f32 %v507_v30, %v292_v29  ;;  %v599_v32 = vpop.f32.mrb[1].mxu1  ;;  %v614_v33 = vpop.f32.mrb[1].mxu0 }
 0x112   :  { %v511_v36 = vmax.f32 %v615_v31, 0.0 }
 0x114   :  { %634 = vrsqrt.f32 %v511_v36  ;;  %vm514_vm4 = vcmp.eq.f32.partialorder %v511_v36, inf  ;;  %v517_v47 = vand.u32 2147483648, %v511_v36  ;;  %vm516_vm5 = vcmp.eq.f32.partialorder %v511_v36, 0.0 }
 0x11e   :  { %v635_v44 = vpop.eup %634 }
 0x11f   :  { %v513_v45 = vmul.f32 %v635_v44, %v511_v36 }
 0x121   :  { %v515_v48 = vsel %vm514_vm4, %v511_v36, %v513_v45 }
 0x122   :  { %v518_v49 = vsel %vm516_vm5, %v517_v47, %v515_v48 }
 0x123   :  { %v534_v50 = vsub.f32 %v518_v49, %v54_v46  ;;  %vm519_vm8 = vcmp.gt.f32.partialorder %v518_v49, %v54_v46  ;;  %vm522_vm9 = vcmp.lt.f32.partialorder %v518_v49, %v54_v46 }
 0x124   :  { %v570_v52 = vsel %vm519_vm8, 1.0, %v709_v0  ;;  %v571_v53 = vsel %vm522_vm9, 1.0, %v709_v0 }
 0x125   :  { %v535_v54 = vand.u32 2147483647, %v534_v50  ;;  %526 = vst.msk [vmem:[#allocation7] sm:$0x1] %vm525_vm7, %v570_v52  ;;  %527 = vst.msk [vmem:[#allocation7 + $0x1] sm:$0x1] %vm525_vm7, %v571_v53 }
 0x127   :  { %v536_v55 = vmul.f32 %v572_v51, %v535_v54 }
 0x129   :  { %v537_v56 = vsel %vm525_vm7, %v536_v55, 0.0 }
 0x12a   :  { %538 = vadd.xlane.f32.xlu0 %v537_v56 }
 0x12b   :  { %669 = shalt.err (!%p666_p12)
}
 0x12c   :  { %s670_s16 = scalar_lea.hbm %s827_s4, 32 }
 0x12d   :  { %p671_p13 = scmp.ne.s32.totalorder %s827_s4, %s670_s16  ;;  %p674_p0 = scmp.lt.u32.totalorder %s670_s16, %s827_s4 }
 0x12f   :  { %p676_p1 = pnand %p674_p0, %p671_p13 }
 0x131   :  { %679 = shalt.err (!%p676_p1)
}
 0x132   :  { %550 = dma.vmem_to_hbm [thread:$0]  %s548_s1, 32, %s827_s4, [#allocation6]  }
 0x133   :  { %s713_s23 = smov [#allocation8]  }
 0x134   :  { %s557_s24 = sshll.u32 %s713_s23, 4  ;;  %s558_s24 = int_to_ptr.vmem [resolvable:$true] %s557_s24 }
 0x135   :  { %s680_s25 = scalar_lea.vmem %s558_s24, 16  ;;  %s684_s26 = scalar_lea.vmem %s558_s24, 32 }
 0x136   :  { %p681_p2 = scmp.ne.s32.totalorder %s558_s24, %s680_s25  ;;  %p685_p3 = scmp.lt.s32.totalorder %s558_s24, %s558_s24 }
 0x137   :  { %p686_p4 = scmp.lt.s32.totalorder %s684_s26, %s680_s25 }
 0x139   :  { %p687_p5 = por %p686_p4, %p685_p3 }
 0x13b   :  { %p688_p6 = pnand %p687_p5, %p681_p2 }
 0x1b7   :  { %v539_v57 = vpop.xlane.xlu0 %538 }
 0x1b8   :  { %540 = vst [vmem:[#allocation8] sm:$0x1] %v539_v57 }
 0x1b9   :  { %691 = shalt.err (!%p688_p6)
}
 0x1ba   :  { %s692_s29 = scalar_lea.hbm %s828_s5, 16 }
 0x1bb   :  { %p693_p7 = scmp.ne.s32.totalorder %s828_s5, %s692_s29  ;;  %p696_p8 = scmp.lt.u32.totalorder %s692_s29, %s828_s5 }
 0x1bd   :  { %p698_p9 = pnand %p696_p8, %p693_p7 }
 0x1bf   :  { %701 = shalt.err (!%p698_p9)
}
 0x1c0   :  { %560 = dma.vmem_to_hbm [thread:$0]  %s558_s24, 16, %s828_s5, [#allocation9]  }
 0x1c1   :  { %704 = dma.done.wait [#allocation6], 32  }
 0x1c2   :  { %705 = vsyncadd [#allocation6], 4294967264 }
 0x1c3   :  { %706 = dma.done.wait [#allocation9], 16  }
 0x1c4   :  { %707 = vsyncadd [#allocation9], 4294967280 }
 0x1c5   :  { %567 = vsyncpa [#allocation5], 1 }
 0x1c6   :  { %568 = vsyncpa [#allocation6], 1 }
 0x1c7   :  { %569 = vsyncpa [#allocation9], 1 }

</bundles_post_ra>
